<compile_context>
chip_gen: v7x
topology: tpu7x:2x2x1
jax: 0.10.0
libtpu: 0.0.40
codegen_flags: <defaults>
</compile_context>

<pallas_src>
import functools

import jax
import jax.numpy as jnp
from jax.experimental import pallas as pl
from jax.experimental.pallas import tpu as pltpu

N_IN = 4
N_OUT = 1000
N_OUT_PAD = 1024          # next multiple of 128 -> lane-dense output vregs
LAYER_DIMS = [(N_IN, 16), (16, 64), (64, 64), (64, 64), (64, N_OUT)]


def propose_net_kernel(x_ref,
                       w1_ref, b1_ref,
                       w2_ref, b2_ref,
                       w3_ref, b3_ref,
                       w4_ref, b4_ref,
                       w5_ref, b5_ref,
                       o_ref,
                       *, exp_dtype):
    """Fused 5-layer MLP + softmax for one (TB, 4) batch tile."""

    def dense(h, w_ref, b_ref):
        # bf16 operands -> native MXU rate; f32 accumulation + f32 bias add.
        return jnp.dot(h.astype(jnp.bfloat16), w_ref[...],
                       preferred_element_type=jnp.float32) + b_ref[...]

    h = x_ref[...]                                   # (TB, 4) bf16
    h = jnp.maximum(dense(h, w1_ref, b1_ref), 0.0)
    h = jnp.maximum(dense(h, w2_ref, b2_ref), 0.0)
    h = jnp.maximum(dense(h, w3_ref, b3_ref), 0.0)
    h = jnp.maximum(dense(h, w4_ref, b4_ref), 0.0)
    logits = dense(h, w5_ref, b5_ref)                # (TB, 1024) f32; pad lanes ~ -1e30

    # softmax over last dim (== F.softmax's implicit dim=1 for a 2-D input).
    m = jnp.max(logits, axis=-1, keepdims=True)                  # f32
    e = jnp.exp((logits - m).astype(exp_dtype))                  # bf16 EUP on v6e/v7x
    denom = jnp.sum(e, axis=-1, keepdims=True, dtype=jnp.float32)
    inv = pl.reciprocal(denom, approx=False)         # exact: one recip per row
    o_ref[...] = (e * inv.astype(exp_dtype)).astype(o_ref.dtype)


def _round_up(n, m):
    return ((n + m - 1) // m) * m


def init_params(key):
    """nn.Linear-style init (uniform +-1/sqrt(fan_in)); weights stored (in, out)."""
    params = []
    for fin, fout in LAYER_DIMS:
        kw, kb, key = jax.random.split(key, 3)
        bound = 1.0 / (fin ** 0.5)
        w = jax.random.uniform(kw, (fin, fout), jnp.float32, -bound, bound)
        b = jax.random.uniform(kb, (1, fout), jnp.float32, -bound, bound)
        params += [w, b]
    return params


@functools.partial(jax.jit, static_argnames=("block_b", "out_dtype", "trim_output"))
def propose_net_forward(x, params, block_b=2048, out_dtype=jnp.bfloat16,
                        trim_output=True):
    B = x.shape[0]
    w1, b1, w2, b2, w3, b3, w4, b4, w5, b5 = params

    # v5e has no bf16 VPU/EUP -> keep the softmax elementwise path in f32 there;
    # v6e/v7x run exp/scale in bf16 (~2x EUP throughput).  Trace-time constant.
    try:
        kind = jax.devices()[0].device_kind.lower()
    except Exception:
        kind = ""
    exp_dtype = jnp.float32 if "v5" in kind else jnp.bfloat16

    # Pad the class dim 1000 -> 1024: zero weight columns, -1e30 bias so the
    # padded lanes softmax to exactly 0 while stores stay unmasked/lane-dense.
    pad = N_OUT_PAD - N_OUT
    w5p = jnp.pad(w5, ((0, 0), (0, pad)))
    b5p = jnp.pad(b5, ((0, 0), (0, pad)), constant_values=-1e30)

    ws = [w.astype(jnp.bfloat16) for w in (w1, w2, w3, w4, w5p)]
    bs = [b1, b2, b3, b4, b5p]                       # biases stay f32

    out_isize = jnp.dtype(out_dtype).itemsize

    # Batch tile: multiple of 8 (sublane).  Aim for >=2 grid steps so the
    # "parallel" batch axis actually uses both v7x TensorCores; cap by block_b
    # and by a per-tile VMEM budget (2x I/O buffers + f32 softmax temps).
    per_row_bytes = N_OUT_PAD * (2 * out_isize + 2 * 4) + 2 * 128 * 2
    tb_cap = max(8, ((48 << 20) // per_row_bytes) // 8 * 8)
    b8 = _round_up(B, 8)
    half = _round_up((b8 + 1) // 2, 8) if b8 > 8 else 8
    tb = max(8, min(block_b, half, tb_cap))
    padded_b = _round_up(B, tb)
    xp = jnp.pad(x, ((0, padded_b - B), (0, 0))).astype(jnp.bfloat16)
    grid = (padded_b // tb,)

    def resident(a):                                 # weights/biases: same block each step
        return pl.BlockSpec(a.shape, lambda i: (0,) * a.ndim)

    in_specs = [pl.BlockSpec((tb, N_IN), lambda i: (i, 0))]
    operands = [xp]
    for w, b in zip(ws, bs):
        in_specs += [resident(w), resident(b)]
        operands += [w, b]

    bytes_w = sum(int(a.size) * a.dtype.itemsize for a in operands[1:])
    # Explicit VMEM budget: double-buffered input/output tiles, resident
    # (double-buffered) weights, ~2 output-tile-sized f32 temporaries, margin.
    vmem_budget = (2 * (tb * 128 * 2 + tb * N_OUT_PAD * out_isize)
                   + 2 * bytes_w
                   + 2 * tb * N_OUT_PAD * 4
                   + (4 << 20))
    vmem_limit = int(min(max(vmem_budget, 48 << 20), 60 << 20))

    flops = 2 * padded_b * sum(fi * fo for fi, fo in
                               [(N_IN, 16), (16, 64), (64, 64), (64, 64),
                                (64, N_OUT_PAD)])
    bytes_io = padded_b * (N_IN * 2 + N_OUT_PAD * out_isize)
    cost = pl.CostEstimate(flops=flops,
                           transcendentals=padded_b * N_OUT_PAD,
                           bytes_accessed=bytes_io + bytes_w)

    out = pl.pallas_call(
        functools.partial(propose_net_kernel, exp_dtype=exp_dtype),
        out_shape=jax.ShapeDtypeStruct((padded_b, N_OUT_PAD), out_dtype),
        grid=grid,
        in_specs=in_specs,
        out_specs=pl.BlockSpec((tb, N_OUT_PAD), lambda i: (i, 0)),
        compiler_params=pltpu.CompilerParams(
            dimension_semantics=("parallel",),       # megacore sharding on v7x
            vmem_limit_bytes=vmem_limit),
        cost_estimate=cost,
    )(*operands)

    if trim_output:
        # NOTE: this slice is an extra HBM copy of the full output.  Callers that
        # can consume the padded (padded_b, 1024) slab (padded class lanes are
        # exactly 0, padded batch rows are junk) should pass trim_output=False.
        return out[:B, :N_OUT]
    return out


if __name__ == "__main__":
    key = jax.random.PRNGKey(0)
    kx, kp = jax.random.split(key)

    B = 8
    x = jax.random.normal(kx, (B, N_IN), jnp.float32)
    params = init_params(kp)

    out = jax.block_until_ready(propose_net_forward(x, params))
    assert out.shape == (B, N_OUT), out.shape

    out_f32 = out.astype(jnp.float32)
    row_sums = jnp.sum(out_f32, axis=-1)
    assert bool(jnp.all(jnp.abs(row_sums - 1.0) < 2e-2)), row_sums
    assert bool(jnp.all(out_f32 >= 0.0))

    # Loose cross-check against a plain f32 JAX reference (kernel uses bf16
    # matmul operands / bf16 output, so tolerance is generous).
    def ref_forward(x, params):
        h = x
        for li in range(5):
            w, b = params[2 * li], params[2 * li + 1]
            h = h @ w + b
            if li < 4:
                h = jnp.maximum(h, 0.0)
        h = h - jnp.max(h, axis=-1, keepdims=True)
        e = jnp.exp(h)
        return e / jnp.sum(e, axis=-1, keepdims=True)

    ref = ref_forward(x, params)
    assert float(jnp.max(jnp.abs(out_f32 - ref))) < 5e-2

    print("KERNEL_OK")
</pallas_src>

<mosaic_0001>
module attributes {stable_mosaic.version = 11 : i64} {
  func.func @propose_net_kernel(%arg0: i32, %arg1: memref<8x4xbf16, #tpu.memory_space<vmem>>, %arg2: memref<4x16xbf16, #tpu.memory_space<vmem>>, %arg3: memref<1x16xf32, #tpu.memory_space<vmem>>, %arg4: memref<16x64xbf16, #tpu.memory_space<vmem>>, %arg5: memref<1x64xf32, #tpu.memory_space<vmem>>, %arg6: memref<64x64xbf16, #tpu.memory_space<vmem>>, %arg7: memref<1x64xf32, #tpu.memory_space<vmem>>, %arg8: memref<64x64xbf16, #tpu.memory_space<vmem>>, %arg9: memref<1x64xf32, #tpu.memory_space<vmem>>, %arg10: memref<64x1024xbf16, #tpu.memory_space<vmem>>, %arg11: memref<1x1024xf32, #tpu.memory_space<vmem>>, %arg12: memref<8x1024xbf16, #tpu.memory_space<vmem>>) attributes {dimension_semantics = [#tpu.dimension_semantics<parallel>], iteration_bounds = array<i64: 1>, scalar_prefetch = 0 : i64, scratch_operands = 0 : i64, tpu.core_type = #tpu.core_type<tc>, window_params = [{transform_indices = @transform_0, window_bounds = array<i64: 8, 4>}, {pipeline_mode = #tpu.pipeline_mode<synchronous>, transform_indices = @transform_1, window_bounds = array<i64: 4, 16>}, {pipeline_mode = #tpu.pipeline_mode<synchronous>, transform_indices = @transform_2, window_bounds = array<i64: 1, 16>}, {pipeline_mode = #tpu.pipeline_mode<synchronous>, transform_indices = @transform_3, window_bounds = array<i64: 16, 64>}, {pipeline_mode = #tpu.pipeline_mode<synchronous>, transform_indices = @transform_4, window_bounds = array<i64: 1, 64>}, {pipeline_mode = #tpu.pipeline_mode<synchronous>, transform_indices = @transform_5, window_bounds = array<i64: 64, 64>}, {pipeline_mode = #tpu.pipeline_mode<synchronous>, transform_indices = @transform_6, window_bounds = array<i64: 1, 64>}, {pipeline_mode = #tpu.pipeline_mode<synchronous>, transform_indices = @transform_7, window_bounds = array<i64: 64, 64>}, {pipeline_mode = #tpu.pipeline_mode<synchronous>, transform_indices = @transform_8, window_bounds = array<i64: 1, 64>}, {pipeline_mode = #tpu.pipeline_mode<synchronous>, transform_indices = @transform_9, window_bounds = array<i64: 64, 1024>}, {pipeline_mode = #tpu.pipeline_mode<synchronous>, transform_indices = @transform_10, window_bounds = array<i64: 1, 1024>}, {transform_indices = @transform_11, window_bounds = array<i64: 8, 1024>}]} {
    %c0 = arith.constant 0 : index
    %c0_0 = arith.constant 0 : index
    %0 = vector.load %arg1[%c0, %c0_0] : memref<8x4xbf16, #tpu.memory_space<vmem>>, vector<8x4xbf16>
    %c0_1 = arith.constant 0 : index
    %c0_2 = arith.constant 0 : index
    %1 = vector.load %arg2[%c0_1, %c0_2] : memref<4x16xbf16, #tpu.memory_space<vmem>>, vector<4x16xbf16>
    %cst = arith.constant dense<0.000000e+00> : vector<8x16xf32>
    %2 = tpu.matmul %0, %1, %cst {dimension_numbers = #tpu.dot_dimension_numbers<[1], [0], [0], [1], [0, 0, 1, 1], [], []>} : vector<8x4xbf16>, vector<4x16xbf16>, vector<8x16xf32> -> vector<8x16xf32>
    %c0_3 = arith.constant 0 : index
    %c0_4 = arith.constant 0 : index
    %3 = vector.load %arg3[%c0_3, %c0_4] : memref<1x16xf32, #tpu.memory_space<vmem>>, vector<1x16xf32>
    %4 = vector.broadcast %3 : vector<1x16xf32> to vector<8x16xf32>
    %5 = arith.addf %2, %4 : vector<8x16xf32>
    %cst_5 = arith.constant 0.000000e+00 : f32
    %6 = vector.broadcast %cst_5 : f32 to vector<8x16xf32>
    %7 = arith.maximumf %5, %6 : vector<8x16xf32>
    %8 = arith.truncf %7 : vector<8x16xf32> to vector<8x16xbf16>
    %c0_6 = arith.constant 0 : index
    %c0_7 = arith.constant 0 : index
    %9 = vector.load %arg4[%c0_6, %c0_7] : memref<16x64xbf16, #tpu.memory_space<vmem>>, vector<16x64xbf16>
    %cst_8 = arith.constant dense<0.000000e+00> : vector<8x64xf32>
    %10 = tpu.matmul %8, %9, %cst_8 {dimension_numbers = #tpu.dot_dimension_numbers<[1], [0], [0], [1], [0, 0, 1, 1], [], []>} : vector<8x16xbf16>, vector<16x64xbf16>, vector<8x64xf32> -> vector<8x64xf32>
    %c0_9 = arith.constant 0 : index
    %c0_10 = arith.constant 0 : index
    %11 = vector.load %arg5[%c0_9, %c0_10] : memref<1x64xf32, #tpu.memory_space<vmem>>, vector<1x64xf32>
    %12 = vector.broadcast %11 : vector<1x64xf32> to vector<8x64xf32>
    %13 = arith.addf %10, %12 : vector<8x64xf32>
    %cst_11 = arith.constant 0.000000e+00 : f32
    %14 = vector.broadcast %cst_11 : f32 to vector<8x64xf32>
    %15 = arith.maximumf %13, %14 : vector<8x64xf32>
    %16 = arith.truncf %15 : vector<8x64xf32> to vector<8x64xbf16>
    %c0_12 = arith.constant 0 : index
    %c0_13 = arith.constant 0 : index
    %17 = vector.load %arg6[%c0_12, %c0_13] : memref<64x64xbf16, #tpu.memory_space<vmem>>, vector<64x64xbf16>
    %cst_14 = arith.constant dense<0.000000e+00> : vector<8x64xf32>
    %18 = tpu.matmul %16, %17, %cst_14 {dimension_numbers = #tpu.dot_dimension_numbers<[1], [0], [0], [1], [0, 0, 1, 1], [], []>} : vector<8x64xbf16>, vector<64x64xbf16>, vector<8x64xf32> -> vector<8x64xf32>
    %c0_15 = arith.constant 0 : index
    %c0_16 = arith.constant 0 : index
    %19 = vector.load %arg7[%c0_15, %c0_16] : memref<1x64xf32, #tpu.memory_space<vmem>>, vector<1x64xf32>
    %20 = vector.broadcast %19 : vector<1x64xf32> to vector<8x64xf32>
    %21 = arith.addf %18, %20 : vector<8x64xf32>
    %cst_17 = arith.constant 0.000000e+00 : f32
    %22 = vector.broadcast %cst_17 : f32 to vector<8x64xf32>
    %23 = arith.maximumf %21, %22 : vector<8x64xf32>
    %24 = arith.truncf %23 : vector<8x64xf32> to vector<8x64xbf16>
    %c0_18 = arith.constant 0 : index
    %c0_19 = arith.constant 0 : index
    %25 = vector.load %arg8[%c0_18, %c0_19] : memref<64x64xbf16, #tpu.memory_space<vmem>>, vector<64x64xbf16>
    %cst_20 = arith.constant dense<0.000000e+00> : vector<8x64xf32>
    %26 = tpu.matmul %24, %25, %cst_20 {dimension_numbers = #tpu.dot_dimension_numbers<[1], [0], [0], [1], [0, 0, 1, 1], [], []>} : vector<8x64xbf16>, vector<64x64xbf16>, vector<8x64xf32> -> vector<8x64xf32>
    %c0_21 = arith.constant 0 : index
    %c0_22 = arith.constant 0 : index
    %27 = vector.load %arg9[%c0_21, %c0_22] : memref<1x64xf32, #tpu.memory_space<vmem>>, vector<1x64xf32>
    %28 = vector.broadcast %27 : vector<1x64xf32> to vector<8x64xf32>
    %29 = arith.addf %26, %28 : vector<8x64xf32>
    %cst_23 = arith.constant 0.000000e+00 : f32
    %30 = vector.broadcast %cst_23 : f32 to vector<8x64xf32>
    %31 = arith.maximumf %29, %30 : vector<8x64xf32>
    %32 = arith.truncf %31 : vector<8x64xf32> to vector<8x64xbf16>
    %c0_24 = arith.constant 0 : index
    %c0_25 = arith.constant 0 : index
    %33 = vector.load %arg10[%c0_24, %c0_25] : memref<64x1024xbf16, #tpu.memory_space<vmem>>, vector<64x1024xbf16>
    %cst_26 = arith.constant dense<0.000000e+00> : vector<8x1024xf32>
    %34 = tpu.matmul %32, %33, %cst_26 {dimension_numbers = #tpu.dot_dimension_numbers<[1], [0], [0], [1], [0, 0, 1, 1], [], []>} : vector<8x64xbf16>, vector<64x1024xbf16>, vector<8x1024xf32> -> vector<8x1024xf32>
    %c0_27 = arith.constant 0 : index
    %c0_28 = arith.constant 0 : index
    %35 = vector.load %arg11[%c0_27, %c0_28] : memref<1x1024xf32, #tpu.memory_space<vmem>>, vector<1x1024xf32>
    %36 = vector.broadcast %35 : vector<1x1024xf32> to vector<8x1024xf32>
    %37 = arith.addf %34, %36 : vector<8x1024xf32>
    %cst_29 = arith.constant dense<0xFF800000> : vector<8xf32>
    %38 = vector.multi_reduction <maximumf>, %37, %cst_29 [1] : vector<8x1024xf32> to vector<8xf32>
    %39 = vector.shape_cast %38 : vector<8xf32> to vector<8x1xf32>
    %40 = vector.broadcast %39 : vector<8x1xf32> to vector<8x1024xf32>
    %41 = arith.subf %37, %40 : vector<8x1024xf32>
    %42 = arith.truncf %41 : vector<8x1024xf32> to vector<8x1024xbf16>
    %43 = math.exp %42 : vector<8x1024xbf16>
    %44 = arith.extf %43 : vector<8x1024xbf16> to vector<8x1024xf32>
    %cst_30 = arith.constant dense<0.000000e+00> : vector<8xf32>
    %45 = vector.multi_reduction <add>, %44, %cst_30 [1] : vector<8x1024xf32> to vector<8xf32>
    %46 = vector.shape_cast %45 : vector<8xf32> to vector<8x1xf32>
    %47 = tpu.reciprocal %46 : vector<8x1xf32> -> vector<8x1xf32>
    %48 = arith.truncf %47 : vector<8x1xf32> to vector<8x1xbf16>
    %49 = vector.broadcast %48 : vector<8x1xbf16> to vector<8x1024xbf16>
    %50 = arith.mulf %43, %49 : vector<8x1024xbf16>
    %c0_31 = arith.constant 0 : index
    %c0_32 = arith.constant 0 : index
    %51 = vector.load %arg12[%c0_31, %c0_32] : memref<8x1024xbf16, #tpu.memory_space<vmem>>, vector<8x1024xbf16>
    tpu.vector_store %arg12[%c0_31, %c0_32], %50 {strides = array<i32>} : memref<8x1024xbf16, #tpu.memory_space<vmem>>, vector<8x1024xbf16>,
    return
  }
  func.func @transform_0(%arg0: i32) -> (i32, i32) {
    %c0_i32 = arith.constant 0 : i32
    %c0_i32_0 = arith.constant 0 : i32
    return %arg0, %c0_i32 : i32, i32
  }
  func.func @transform_1(%arg0: i32) -> (i32, i32) {
    %c0_i32 = arith.constant 0 : i32
    %c0_i32_0 = arith.constant 0 : i32
    %c0_i32_1 = arith.constant 0 : i32
    return %c0_i32, %c0_i32_0 : i32, i32
  }
  func.func @transform_2(%arg0: i32) -> (i32, i32) {
    %c0_i32 = arith.constant 0 : i32
    %c0_i32_0 = arith.constant 0 : i32
    %c0_i32_1 = arith.constant 0 : i32
    return %c0_i32, %c0_i32_0 : i32, i32
  }
  func.func @transform_3(%arg0: i32) -> (i32, i32) {
    %c0_i32 = arith.constant 0 : i32
    %c0_i32_0 = arith.constant 0 : i32
    %c0_i32_1 = arith.constant 0 : i32
    return %c0_i32, %c0_i32_0 : i32, i32
  }
  func.func @transform_4(%arg0: i32) -> (i32, i32) {
    %c0_i32 = arith.constant 0 : i32
    %c0_i32_0 = arith.constant 0 : i32
    %c0_i32_1 = arith.constant 0 : i32
    return %c0_i32, %c0_i32_0 : i32, i32
  }
  func.func @transform_5(%arg0: i32) -> (i32, i32) {
    %c0_i32 = arith.constant 0 : i32
    %c0_i32_0 = arith.constant 0 : i32
    %c0_i32_1 = arith.constant 0 : i32
    return %c0_i32, %c0_i32_0 : i32, i32
  }
  func.func @transform_6(%arg0: i32) -> (i32, i32) {
    %c0_i32 = arith.constant 0 : i32
    %c0_i32_0 = arith.constant 0 : i32
    %c0_i32_1 = arith.constant 0 : i32
    return %c0_i32, %c0_i32_0 : i32, i32
  }
  func.func @transform_7(%arg0: i32) -> (i32, i32) {
    %c0_i32 = arith.constant 0 : i32
    %c0_i32_0 = arith.constant 0 : i32
    %c0_i32_1 = arith.constant 0 : i32
    return %c0_i32, %c0_i32_0 : i32, i32
  }
  func.func @transform_8(%arg0: i32) -> (i32, i32) {
    %c0_i32 = arith.constant 0 : i32
    %c0_i32_0 = arith.constant 0 : i32
    %c0_i32_1 = arith.constant 0 : i32
    return %c0_i32, %c0_i32_0 : i32, i32
  }
  func.func @transform_9(%arg0: i32) -> (i32, i32) {
    %c0_i32 = arith.constant 0 : i32
    %c0_i32_0 = arith.constant 0 : i32
    %c0_i32_1 = arith.constant 0 : i32
    return %c0_i32, %c0_i32_0 : i32, i32
  }
  func.func @transform_10(%arg0: i32) -> (i32, i32) {
    %c0_i32 = arith.constant 0 : i32
    %c0_i32_0 = arith.constant 0 : i32
    %c0_i32_1 = arith.constant 0 : i32
    return %c0_i32, %c0_i32_0 : i32, i32
  }
  func.func @transform_11(%arg0: i32) -> (i32, i32) {
    %c0_i32 = arith.constant 0 : i32
    %c0_i32_0 = arith.constant 0 : i32
    return %arg0, %c0_i32 : i32, i32
  }
}

</mosaic_0001>

<bundles_post_ra>
// kernel: propose_net_forward.1
= control target key start
LH: loop header
LB: loop body
LE: loop exit
PB: predicated region body
PF: predicated region fallthrough
CT: control target
= control target key end

     0   :  { %vm53_vm0 = vcmask 1041408   ;;  %v1010_v1 = vmov 0.0   ;;  %vm1011_vm1 = vmmov 0   ;;  %vm49_vm2 = vcmask 31744   ;;  %s1240_s0 = inlined_call_operand.vmem [shape: bf16[8,4], index: 0, kind: input, shape index: {}]   ;;  %s1241_s1 = inlined_call_operand.vmem [shape: bf16[4,16], index: 1, kind: input, shape index: {}]   ;;  %s1242_s2 = inlined_call_operand.vmem [shape: f32[1,16], index: 2, kind: input, shape index: {}]   ;;  %s1243_s3 = inlined_call_operand.vmem [shape: bf16[16,64], index: 3, kind: input, shape index: {}]   ;;  %s1244_s4 = inlined_call_operand.vmem [shape: f32[1,64], index: 4, kind: input, shape index: {}]   ;;  %s1245_s5 = inlined_call_operand.vmem [shape: bf16[64,64], index: 5, kind: input, shape index: {}]   ;;  %s1246_s6 = inlined_call_operand.vmem [shape: f32[1,64], index: 6, kind: input, shape index: {}]   ;;  %s1247_s7 = inlined_call_operand.vmem [shape: bf16[64,64], index: 7, kind: input, shape index: {}]   ;;  %s1248_s8 = inlined_call_operand.vmem [shape: f32[1,64], index: 8, kind: input, shape index: {}]   ;;  %s1249_s9 = inlined_call_operand.vmem [shape: bf16[64,1024], index: 9, kind: input, shape index: {}]   ;;  %s1250_s10 = inlined_call_operand.vmem [shape: f32[1,1024], index: 10, kind: input, shape index: {}]   ;;  %s1251_s11 = inlined_call_operand.hbm [shape: bf16[8,1024], index: 11, kind: output, shape index: {}]  }
   0x1   :  { %v41_v0 = vld [vmem:[%s1241_s1] sm:$0x3]  ;;  %919 = vmatprep.subr.bf16.mxu0 %v1010_v1  ;;  %921 = vmatprep.mubr.msk.bf16.mxu0 %vm1011_vm1, %v1010_v1 }
   0x2   :  { %v55_v2 = vsel %vm53_vm0, %v41_v0, 0  ;;  %v40_v3 = vld [vmem:[%s1240_s0] sm:$0xf]  ;;  %925 = vmatprep.subr.bf16.mxu1 %v1010_v1  ;;  %927 = vmatprep.mubr.msk.bf16.mxu1 %vm1011_vm1, %v1010_v1 }
   0x3   :  { %920 = vmatpush3.bf16.msra.mxu0 %v55_v2 }
   0x4   :  { %931 = vmatprep.subr.bf16.mxu0 %v1010_v1 }
   0x6   :  { %922 = vmatmul.mubr.msk.bf16.vlgmr.msra.gmra.mrb[0].mxu0 %vm49_vm2, %v40_v3 }
   0x7   :  { %939 = vmatprep.mubr.msk.bf16.mxu0 %vm1011_vm1, %v1010_v1 }
   0x8   :  { %16 = vsyncpa [#allocation3], 0  ;;  %v959_v4 = vld [vmem:[%s1243_s3] sm:$0xff]   ;;  %v961_v6 = vld [vmem:[%s1245_s5 + $0x8] sm:$0xff]   ;;  %vm114_vm3 = vcmask 130048   ;;  %vm199_vm4 = vcmask 523264  }
   0x9   :  { %926 = vmatpush3.bf16.msra.mxu1 %v959_v4  ;;  %v960_v5 = vld [vmem:[%s1245_s5] sm:$0xff]   ;;  %v962_v15 = vld [vmem:[%s1245_s5 + $0x10] sm:$0xff]   ;;  %v963_v16 = vld [vmem:[%s1245_s5 + $0x18] sm:$0xff]  }
   0xa   :  { %943 = vmatprep.subr.bf16.mxu1 %v1010_v1  ;;  %932 = vmatpush3.bf16.msra.mxu0 %v960_v5  ;;  %v848_v7 = vld [vmem:[%s1242_s2] ss:$0 sm:$0xff]  ;;  %v965_v18 = vld [vmem:[%s1247_s7 + $0x8] sm:$0xff]   ;;  %v966_v27 = vld [vmem:[%s1247_s7 + $0x10] sm:$0xff]  }
   0xb   :  { %933 = vmatprep.subr.bf16.mxu0 %v1010_v1  ;;  %v964_v17 = vld [vmem:[%s1247_s7] sm:$0xff]   ;;  %v967_v28 = vld [vmem:[%s1247_s7 + $0x18] sm:$0xff]   ;;  %v330_v31 = vld [vmem:[%s1249_s9 + $0x8] sm:$0xff] }
   0xc   :  { %v850_v19 = vld [vmem:[%s1244_s4] ss:$0 sm:$0xff]  ;;  %v334_v34 = vld [vmem:[%s1249_s9 + $0x28] sm:$0xff]  ;;  %v331_v5 = vld [vmem:[%s1249_s9 + $0x10] sm:$0xff] }
   0xd   :  { %v329_v29 = vld [vmem:[%s1249_s9] sm:$0xff]  ;;  %v867_v37 = vcombine.low %v330_v31, %v334_v34  ;;  %v868_v38 = vcombine.high %v330_v31, %v334_v34  ;;  %v338_v50 = vld [vmem:[%s1249_s9 + $0x48] sm:$0xff]  ;;  %v352_v31 = vld [vmem:[%s1249_s9 + $0xb8] sm:$0xff] }
   0xe   :  { %934 = vmatpush3.bf16.msra.mxu0 %v961_v6  ;;  %v333_v30 = vld [vmem:[%s1249_s9 + $0x20] sm:$0xff]  ;;  %v342_v51 = vld [vmem:[%s1249_s9 + $0x68] sm:$0xff]  ;;  %v335_v6 = vld [vmem:[%s1249_s9 + $0x30] sm:$0xff] }
   0xf   :  { %935 = vmatprep.subr.bf16.mxu0 %v1010_v1  ;;  %v865_v32 = vcombine.low %v329_v29, %v333_v30  ;;  %v866_v33 = vcombine.high %v329_v29, %v333_v30  ;;  %v337_v35 = vld [vmem:[%s1249_s9 + $0x40] sm:$0xff]  ;;  %v876_v55 = vcombine.high %v338_v50, %v342_v51  ;;  %v346_v56 = vld [vmem:[%s1249_s9 + $0x88] sm:$0xff]  ;;  %v875_v58 = vcombine.low %v338_v50, %v342_v51  ;;  %v351_v29 = vld [vmem:[%s1249_s9 + $0xb0] sm:$0xff] }
  0x10   :  { %v341_v36 = vld [vmem:[%s1249_s9 + $0x60] sm:$0xff]  ;;  %v350_v57 = vld [vmem:[%s1249_s9 + $0xa8] sm:$0xff]  ;;  %v348_v30 = vld [vmem:[%s1249_s9 + $0x98] sm:$0xff] }
  0x11   :  { %v874_v39 = vcombine.high %v337_v35, %v341_v36  ;;  %v873_v40 = vcombine.low %v337_v35, %v341_v36  ;;  %v345_v41 = vld [vmem:[%s1249_s9 + $0x80] sm:$0xff]  ;;  %v884_v59 = vcombine.high %v346_v56, %v350_v57  ;;  %v883_v60 = vcombine.low %v346_v56, %v350_v57  ;;  %v354_v63 = vld [vmem:[%s1249_s9 + $0xc8] sm:$0xff]  ;;  %v355_v36 = vld [vmem:[%s1249_s9 + $0xd0] sm:$0xff] }
  0x12   :  { %936 = vmatpush3.bf16.msra.mxu0 %v962_v15  ;;  %v349_v42 = vld [vmem:[%s1249_s9 + $0xa0] sm:$0xff]  ;;  %v888_v35 = vcombine.high %v348_v30, %v352_v31 }
  0x13   :  { %937 = vmatprep.subr.bf16.mxu0 %v1010_v1  ;;  %v882_v43 = vcombine.high %v345_v41, %v349_v42  ;;  %v881_v44 = vcombine.low %v345_v41, %v349_v42  ;;  %v853_v45 = vld [vmem:[%s1246_s6] ss:$0 sm:$0xff]  ;;  %v887_v41 = vcombine.low %v348_v30, %v352_v31 }
  0x14   :  { %v353_v61 = vld [vmem:[%s1249_s9 + $0xc0] sm:$0xff] }
  0x15   :  { %v357_v62 = vld [vmem:[%s1249_s9 + $0xe0] sm:$0xff] }
  0x16   :  { %938 = vmatpush3.bf16.msra.mxu0 %v963_v16  ;;  %v890_v0 = vcombine.high %v353_v61, %v357_v62  ;;  %v889_v2 = vcombine.low %v353_v61, %v357_v62 }
  0x17   :  { %566 = vmatprep.subr.bf16.mxu0 %v866_v33 }
  0xd9   :  { %v91_v8 = vpop.f32.mrb[0].mxu0 }
  0xda   :  { %v92_v9 = vadd.f32 %v848_v7, %v91_v8  ;;  %v923_v10 = vpop.f32.mrb[1].mxu0  ;;  %v332_v7 = vld [vmem:[%s1249_s9 + $0x18] sm:$0xff]  ;;  %v870_v8 = vcombine.high %v331_v5, %v335_v6 }
  0xdb   :  { %v94_v11 = vpop.f32.mrb[2].mxu0  ;;  %v869_v10 = vcombine.low %v331_v5, %v335_v6 }
  0xdc   :  { %v97_v12 = vmax.f32 %v92_v9, 0.0  ;;  %v924_v13 = vpop.f32.mrb[3].mxu0  ;;  %v336_v9 = vld [vmem:[%s1249_s9 + $0x38] sm:$0xff] }
  0xdd   :  { %v871_v11 = vcombine.low %v332_v7, %v336_v9  ;;  %v1012_v13 = vmov 0  }
  0xde   :  { %v98_v14 = vpack.c.bf16 %v97_v12, %v97_v12  ;;  %v872_v12 = vcombine.high %v332_v7, %v336_v9 }
  0xe0   :  { %928 = vmatmul.mubr.msk.bf16.vlgmr.msra.gmra.mrb[0].mxu1 %vm114_vm3, %v98_v14  ;;  %v859_v14 = vld [vmem:[%s1248_s8] ss:$0 sm:$0xff] }
  0xe1   :  { %951 = vmatprep.mubr.msk.bf16.mxu1 %vm1011_vm1, %v1010_v1  ;;  %944 = vmatpush3.bf16.msra.mxu1 %v964_v17 }
  0xe2   :  { %945 = vmatprep.subr.bf16.mxu1 %v1010_v1 }
  0xe5   :  { %946 = vmatpush3.bf16.msra.mxu1 %v965_v18  ;;  %v339_v18 = vld [vmem:[%s1249_s9 + $0x50] sm:$0xff] }
  0xe6   :  { %947 = vmatprep.subr.bf16.mxu1 %v1010_v1 }
  0xe9   :  { %948 = vmatpush3.bf16.msra.mxu1 %v966_v27 }
  0xea   :  { %949 = vmatprep.subr.bf16.mxu1 %v1010_v1  ;;  %v358_v1 = vld [vmem:[%s1249_s9 + $0xe8] sm:$0xff] }
  0xeb   :  { %v891_v3 = vcombine.low %v354_v63, %v358_v1  ;;  %v892_v4 = vcombine.high %v354_v63, %v358_v1 }
  0xed   :  { %950 = vmatpush3.bf16.msra.mxu1 %v967_v28  ;;  %v347_v28 = vld [vmem:[%s1249_s9 + $0x90] sm:$0xff] }
  0xee   :  { %607 = vmatprep.subr.bf16.mxu1 %v868_v38  ;;  %v886_v34 = vcombine.high %v347_v28, %v351_v29  ;;  %v356_v38 = vld [vmem:[%s1249_s9 + $0xd8] sm:$0xff] }
 0x1b3   :  { %v152_v20 = vpop.f32.mrb[0].mxu1 }
 0x1b4   :  { %v153_v21 = vadd.f32 %v850_v19, %v152_v20  ;;  %v929_v22 = vpop.f32.mrb[1].mxu1  ;;  %v343_v20 = vld [vmem:[%s1249_s9 + $0x70] sm:$0xff] }
 0x1b5   :  { %v155_v23 = vpop.f32.mrb[2].mxu1  ;;  %v344_v22 = vld [vmem:[%s1249_s9 + $0x78] sm:$0xff] }
 0x1b6   :  { %v158_v24 = vmax.f32 %v153_v21, 0.0  ;;  %v930_v25 = vpop.f32.mrb[3].mxu1  ;;  %v340_v21 = vld [vmem:[%s1249_s9 + $0x58] sm:$0xff] }
 0x1b7   :  { %v880_v27 = vcombine.high %v340_v21, %v344_v22  ;;  %v879_v33 = vcombine.low %v340_v21, %v344_v22 }
 0x1b8   :  { %v159_v26 = vpack.c.bf16 %v158_v24, %v158_v24 }
 0x1ba   :  { %940 = vmatmul.mubr.msk.bf16.vlgmr.msra.gmra.mrb[4].mxu0 %vm199_vm4, %v159_v26  ;;  %v878_v26 = vcombine.high %v339_v18, %v343_v20 }
 0x1bb   :  { %567 = vmatpush1.bf16.msra.mxu0 %v865_v32  ;;  %598 = vmatprep.mubr.bf16.mxu0 %v1012_v13  ;;  %v877_v32 = vcombine.low %v339_v18, %v343_v20 }
 0x1bc   :  { %568 = vmatprep.subr.bf16.mxu0 %v874_v39  ;;  %v360_v39 = vld [vmem:[%s1249_s9 + $0xf8] sm:$0xff] }
 0x1bf   :  { %569 = vmatpush1.bf16.msra.mxu0 %v873_v40  ;;  %v885_v40 = vcombine.low %v347_v28, %v351_v29 }
 0x1c0   :  { %570 = vmatprep.subr.bf16.mxu0 %v882_v43  ;;  %v896_v43 = vcombine.high %v356_v38, %v360_v39 }
 0x1c3   :  { %571 = vmatpush1.bf16.msra.mxu0 %v881_v44 }
 0x1c4   :  { %572 = vmatprep.subr.bf16.mxu0 %v890_v0 }
 0x1c7   :  { %573 = vmatpush1.bf16.msra.mxu0 %v889_v2 }
 0x1c8   :  { %648 = vmatprep.subr.bf16.mxu0 %v870_v8 }
 0x28d   :  { %v237_v46 = vpop.f32.mrb[4].mxu0 }
 0x28e   :  { %v238_v47 = vadd.f32 %v853_v45, %v237_v46  ;;  %v941_v48 = vpop.f32.mrb[5].mxu0  ;;  %v895_v45 = vcombine.low %v356_v38, %v360_v39 }
 0x28f   :  { %v240_v49 = vpop.f32.mrb[6].mxu0  ;;  %v363_v48 = vlaneseq }
 0x290   :  { %v243_v52 = vmax.f32 %v238_v47, 0.0  ;;  %v942_v53 = vpop.f32.mrb[7].mxu0 }
 0x292   :  { %v244_v54 = vpack.c.bf16 %v243_v52, %v243_v52 }
 0x294   :  { %952 = vmatmul.mubr.msk.bf16.vlgmr.msra.gmra.mrb[4].mxu1 %vm199_vm4, %v244_v54 }
 0x295   :  { %608 = vmatpush1.bf16.msra.mxu1 %v867_v37  ;;  %639 = vmatprep.mubr.bf16.mxu1 %v1012_v13  ;;  %v359_v37 = vld [vmem:[%s1249_s9 + $0xf0] sm:$0xff] }
 0x296   :  { %609 = vmatprep.subr.bf16.mxu1 %v876_v55  ;;  %v894_v42 = vcombine.high %v355_v36, %v359_v37  ;;  %v893_v44 = vcombine.low %v355_v36, %v359_v37  ;;  %v364_v55 = vshrl.u32 %v363_v48, 7 }
 0x298   :  { %v365_v56 = vsub.s32 0, %v364_v55  ;;  %v373_v57 = vsub.s32 2, %v364_v55  ;;  %v369_v61 = vsub.s32 1, %v364_v55  ;;  %v377_v62 = vsub.s32 3, %v364_v55 }
 0x299   :  { %610 = vmatpush1.bf16.msra.mxu1 %v875_v58  ;;  %v381_v58 = vsub.s32 4, %v364_v55  ;;  %v385_v63 = vsub.s32 5, %v364_v55  ;;  %v393_v0 = vsub.s32 7, %v364_v55 }
 0x29a   :  { %611 = vmatprep.subr.bf16.mxu1 %v884_v59  ;;  %v389_v59 = vsub.s32 6, %v364_v55 }
 0x29d   :  { %612 = vmatpush1.bf16.msra.mxu1 %v883_v60  ;;  %v361_v60 = vld [vmem:[%s1250_s10] sm:$0xff]  ;;  %s1013_s10 = smov [#allocation2]  }
 0x29e   :  { %613 = vmatprep.subr.bf16.mxu1 %v892_v4  ;;  %v366_v1 = vrot.slane %v361_v60, %v365_v56  ;;  %v374_v2 = vrot.slane %v361_v60, %v373_v57  ;;  %v390_v4 = vrot.slane %v361_v60, %v389_v59  ;;  %v370_v5 = vrot.slane %v361_v60, %v369_v61  ;;  %s840_s28 = sshll.u32 %s1013_s10, 4  ;;  %s841_s28 = int_to_ptr.vmem [resolvable:$true] %s840_s28 }
 0x29f   :  { %v378_v6 = vrot.slane %v361_v60, %v377_v62  ;;  %v386_v7 = vrot.slane %v361_v60, %v385_v63  ;;  %v394_v8 = vrot.slane %v361_v60, %v393_v0  ;;  %s986_s29 = scalar_lea.vmem %s841_s28, 512  ;;  %p991_p1 = scmp.lt.s32.totalorder %s841_s28, %s841_s28 }
 0x2a0   :  { %p987_p0 = scmp.ne.s32.totalorder %s841_s28, %s986_s29  ;;  %p992_p2 = scmp.lt.s32.totalorder %s986_s29, %s986_s29 }
 0x2a1   :  { %614 = vmatpush1.bf16.msra.mxu1 %v891_v3  ;;  %v382_v3 = vrot.slane %v361_v60, %v381_v58 }
 0x2a2   :  { %689 = vmatprep.subr.bf16.mxu1 %v872_v12  ;;  %p993_p3 = por %p992_p2, %p991_p1 }
 0x2a4   :  { %p994_p4 = pnand %p993_p3, %p987_p0 }
 0x367   :  { %v321_v15 = vpop.f32.mrb[4].mxu1 }
 0x368   :  { %v322_v16 = vadd.f32 %v859_v14, %v321_v15  ;;  %v953_v17 = vpop.f32.mrb[5].mxu1 }
 0x369   :  { %v324_v19 = vpop.f32.mrb[6].mxu1 }
 0x36a   :  { %v327_v23 = vmax.f32 %v322_v16, 0.0  ;;  %v954_v24 = vpop.f32.mrb[7].mxu1 }
 0x36c   :  { %v328_v25 = vpack.c.bf16 %v327_v23, %v327_v23 }
 0x36e   :  { %897 = vmatmul.mubr.msk.bf16.vlgmr.msra.gmra.mrb[8].mxu0 %vm199_vm4, %v328_v25  ;;  %898 = vmatmul.mubr.msk.bf16.vlgmr.msra.gmra.mrb[8].mxu1 %vm199_vm4, %v328_v25 }
 0x36f   :  { %649 = vmatpush1.bf16.msra.mxu0 %v869_v10  ;;  %690 = vmatpush1.bf16.msra.mxu1 %v871_v11 }
 0x370   :  { %650 = vmatprep.subr.bf16.mxu0 %v878_v26  ;;  %691 = vmatprep.subr.bf16.mxu1 %v880_v27 }
 0x371   :  { %680 = vmatprep.mubr.bf16.mxu0 %v1012_v13  ;;  %721 = vmatprep.mubr.bf16.mxu1 %v1012_v13 }
 0x373   :  { %651 = vmatpush1.bf16.msra.mxu0 %v877_v32  ;;  %692 = vmatpush1.bf16.msra.mxu1 %v879_v33 }
 0x374   :  { %652 = vmatprep.subr.bf16.mxu0 %v886_v34  ;;  %693 = vmatprep.subr.bf16.mxu1 %v888_v35 }
 0x377   :  { %653 = vmatpush1.bf16.msra.mxu0 %v885_v40  ;;  %694 = vmatpush1.bf16.msra.mxu1 %v887_v41 }
 0x378   :  { %654 = vmatprep.subr.bf16.mxu0 %v894_v42  ;;  %695 = vmatprep.subr.bf16.mxu1 %v896_v43 }
 0x37b   :  { %655 = vmatpush1.bf16.msra.mxu0 %v893_v44  ;;  %696 = vmatpush1.bf16.msra.mxu1 %v895_v45 }
 0x37e   :  { %899 = vmatmul.mubr.msk.bf16.vlgmr.msra.gmra.mrb[12].mxu0 %vm199_vm4, %v328_v25  ;;  %900 = vmatmul.mubr.msk.bf16.vlgmr.msra.gmra.mrb[12].mxu1 %vm199_vm4, %v328_v25 }
 0x441   :  { %v600_v46 = vpop.f32.mrb[8].mxu0  ;;  %v641_v47 = vpop.f32.mrb[8].mxu1 }
 0x442   :  { %v602_v49 = vpop.f32.mrb[9].mxu0  ;;  %v643_v50 = vpop.f32.mrb[9].mxu1  ;;  %v601_v11 = vadd.f32 %v600_v46, %v366_v1  ;;  %v642_v12 = vadd.f32 %v641_v47, %v374_v2 }
 0x443   :  { %v604_v51 = vpop.f32.mrb[10].mxu0  ;;  %v645_v52 = vpop.f32.mrb[10].mxu1  ;;  %v603_v17 = vadd.f32 %v602_v49, %v370_v5  ;;  %v644_v18 = vadd.f32 %v643_v50, %v378_v6 }
 0x444   :  { %v605_v53 = vpop.f32.mrb[11].mxu0  ;;  %v646_v54 = vpop.f32.mrb[11].mxu1 }
 0x451   :  { %v682_v9 = vpop.f32.mrb[12].mxu0  ;;  %v723_v10 = vpop.f32.mrb[12].mxu1 }
 0x452   :  { %v683_v13 = vadd.f32 %v682_v9, %v382_v3  ;;  %v724_v14 = vadd.f32 %v723_v10, %v390_v4  ;;  %v684_v15 = vpop.f32.mrb[13].mxu0  ;;  %v725_v16 = vpop.f32.mrb[13].mxu1 }
 0x453   :  { %v685_v19 = vadd.f32 %v684_v15, %v386_v7  ;;  %v726_v20 = vadd.f32 %v725_v16, %v394_v8  ;;  %v686_v21 = vpop.f32.mrb[14].mxu0  ;;  %v727_v22 = vpop.f32.mrb[14].mxu1 }
 0x454   :  { %v730_v23 = vmax.f32 %v601_v11, %v683_v13  ;;  %v732_v24 = vmax.f32 %v642_v12, %v724_v14  ;;  %v687_v25 = vpop.f32.mrb[15].mxu0  ;;  %v728_v26 = vpop.f32.mrb[15].mxu1 }
 0x455   :  { %v731_v27 = vmax.f32 %v603_v17, %v685_v19  ;;  %v733_v28 = vmax.f32 %v644_v18, %v726_v20 }
 0x457   :  { %v734_v29 = vmax.f32 %v730_v23, %v731_v27  ;;  %v735_v30 = vmax.f32 %v732_v24, %v733_v28 }
 0x459   :  { %v736_v31 = vmax.f32 %v734_v29, %v735_v30 }
 0x45b   :  { %737 = vmax.xlane.f32.xlu0 %v736_v31 }
 0x4e8   :  { %v738_v32 = vpop.xlane.xlu0 %737 }
 0x4e9   :  { %v739_v33 = vsub.f32 %v601_v11, %v738_v32  ;;  %v740_v34 = vsub.f32 %v603_v17, %v738_v32  ;;  %v741_v35 = vsub.f32 %v642_v12, %v738_v32  ;;  %v742_v36 = vsub.f32 %v644_v18, %v738_v32 }
 0x4ea   :  { %v743_v37 = vsub.f32 %v683_v13, %v738_v32  ;;  %v744_v38 = vsub.f32 %v685_v19, %v738_v32  ;;  %v745_v44 = vsub.f32 %v724_v14, %v738_v32  ;;  %v746_v50 = vsub.f32 %v726_v20, %v738_v32 }
 0x4eb   :  { %v747_v39 = vpack.c.bf16 %v739_v33, %v739_v33  ;;  %v748_v40 = vpack.c.bf16 %v740_v34, %v740_v34  ;;  %v749_v41 = vpack.c.bf16 %v741_v35, %v741_v35  ;;  %v750_v42 = vpack.c.bf16 %v742_v36, %v742_v36 }
 0x4ec   :  { %v751_v43 = vpack.c.bf16 %v743_v37, %v743_v37  ;;  %v752_v48 = vpack.c.bf16 %v744_v38, %v744_v38  ;;  %v753_v52 = vpack.c.bf16 %v745_v44, %v745_v44  ;;  %v754_v53 = vpack.c.bf16 %v746_v50, %v746_v50 }
 0x4ed   :  { %v756_v45 = vmul.bf16 1069105081, %v747_v39  ;;  %v759_v46 = vmul.bf16 1069105081, %v748_v40  ;;  %v762_v47 = vmul.bf16 1069105081, %v749_v41 }
 0x4ee   :  { %v765_v49 = vmul.bf16 1069105081, %v750_v42  ;;  %v768_v51 = vmul.bf16 1069105081, %v751_v43  ;;  %v771_v54 = vmul.bf16 1069105081, %v752_v48 }
 0x4ef   :  { %968 = vpow.bf16 %v756_v45  ;;  %v774_v55 = vmul.bf16 1069105081, %v753_v52  ;;  %v777_v56 = vmul.bf16 1069105081, %v754_v53 }
 0x4f0   :  { %970 = vpow.bf16 %v759_v46 }
 0x4f1   :  { %972 = vpow.bf16 %v762_v47 }
 0x4f2   :  { %974 = vpow.bf16 %v765_v49 }
 0x4f3   :  { %976 = vpow.bf16 %v768_v51 }
 0x4f4   :  { %978 = vpow.bf16 %v771_v54 }
 0x4f5   :  { %980 = vpow.bf16 %v774_v55 }
 0x4f6   :  { %982 = vpow.bf16 %v777_v56 }
 0x4fa   :  { %v969_v57 = vpop.eup %968 }
 0x4fb   :  { %v971_v58 = vpop.eup %970  ;;  %v779_v59 = vunpack.c.l.bf16 %v969_v57 }
 0x4fc   :  { %v973_v60 = vpop.eup %972  ;;  %v780_v61 = vunpack.c.l.bf16 %v971_v58 }
 0x4fd   :  { %v975_v62 = vpop.eup %974  ;;  %v781_v63 = vunpack.c.l.bf16 %v973_v60 }
 0x4fe   :  { %v787_v0 = vadd.f32 %v780_v61, %v779_v59  ;;  %v977_v1 = vpop.eup %976  ;;  %v782_v2 = vunpack.c.l.bf16 %v975_v62 }
 0x4ff   :  { %v979_v4 = vpop.eup %978  ;;  %v783_v5 = vunpack.c.l.bf16 %v977_v1 }
 0x500   :  { %v788_v3 = vadd.f32 %v787_v0, %v781_v63  ;;  %v981_v7 = vpop.eup %980  ;;  %v784_v8 = vunpack.c.l.bf16 %v979_v4 }
 0x501   :  { %v983_v10 = vpop.eup %982  ;;  %v785_v11 = vunpack.c.l.bf16 %v981_v7 }
 0x502   :  { %v789_v6 = vadd.f32 %v788_v3, %v782_v2  ;;  %v786_v13 = vunpack.c.l.bf16 %v983_v10 }
 0x504   :  { %v790_v9 = vadd.f32 %v789_v6, %v783_v5 }
 0x506   :  { %v791_v12 = vadd.f32 %v790_v9, %v784_v8 }
 0x508   :  { %v792_v14 = vadd.f32 %v791_v12, %v785_v11 }
 0x50a   :  { %v793_v15 = vadd.f32 %v792_v14, %v786_v13 }
 0x50c   :  { %794 = vadd.xlane.f32.xlu0 %v793_v15 }
 0x599   :  { %v795_v16 = vpop.xlane.xlu0 %794 }
 0x59a   :  { %984 = vrcp.f32 %v795_v16 }
 0x5a4   :  { %v985_v17 = vpop.eup %984 }
 0x5a5   :  { %v797_v18 = vpack.c.bf16 %v985_v17, %v985_v17 }
 0x5a7   :  { %v798_v19 = vmul.bf16 %v969_v57, %v797_v18  ;;  %v799_v20 = vmul.bf16 %v971_v58, %v797_v18  ;;  %v800_v21 = vmul.bf16 %v973_v60, %v797_v18  ;;  %v801_v22 = vmul.bf16 %v975_v62, %v797_v18 }
 0x5a8   :  { %v802_v23 = vmul.bf16 %v977_v1, %v797_v18  ;;  %v803_v24 = vmul.bf16 %v979_v4, %v797_v18  ;;  %v804_v25 = vmul.bf16 %v981_v7, %v797_v18  ;;  %v805_v26 = vmul.bf16 %v983_v10, %v797_v18 }
 0x5a9   :  { %v901_v27 = vcombine.low %v798_v19, %v799_v20  ;;  %v902_v28 = vcombine.low %v800_v21, %v801_v22 }
 0x5aa   :  { %v903_v29 = vcombine.low %v802_v23, %v803_v24  ;;  %v904_v30 = vcombine.low %v804_v25, %v805_v26 }
 0x5ab   :  { %830 = vst [vmem:[#allocation2] sm:$0xff] %v901_v27  ;;  %831 = vst [vmem:[#allocation2 + $0x8] sm:$0xff] %v902_v28 }
 0x5ac   :  { %832 = vst [vmem:[#allocation2 + $0x10] sm:$0xff] %v903_v29  ;;  %833 = vst [vmem:[#allocation2 + $0x18] sm:$0xff] %v904_v30 }
 0x5ad   :  { %997 = shalt.err (!%p994_p4)
}
 0x5ae   :  { %s998_s12 = scalar_lea.hbm %s1251_s11, 512 }
 0x5af   :  { %p999_p5 = scmp.ne.s32.totalorder %s1251_s11, %s998_s12  ;;  %p1002_p6 = scmp.lt.u32.totalorder %s998_s12, %s1251_s11 }
 0x5b1   :  { %p1004_p7 = pnand %p1002_p6, %p999_p5 }
 0x5b3   :  { %1007 = shalt.err (!%p1004_p7)
}
 0x5b4   :  { %843 = dma.vmem_to_hbm [thread:$0]  %s841_s28, 512, %s1251_s11, [#allocation3]  }
 0x5b5   :  { %1008 = dma.done.wait [#allocation3], 512  }
 0x5b6   :  { %1009 = vsyncadd [#allocation3], 4294966784 }
 0x5b7   :  { %847 = vsyncpa [#allocation3], 1 }

</bundles_post_ra>
